<compile_context>
chip_gen: v7x
topology: tpu7x:2x2x1
jax: 0.10.0
libtpu: 0.0.40
codegen_flags: <defaults>
</compile_context>

<pallas_src>
import functools

import jax
import jax.numpy as jnp
from jax import lax
from jax.experimental import pallas as pl
from jax.experimental.pallas import tpu as pltpu

EPS = 1e-5  # nn.LayerNorm default


def _layernorm_kernel(x_ref, g_ref, b_ref, o_ref):
    # x_ref: (Bblk, C, T) or (Bblk, C, S, 128) VMEM block; channel axis = 1.
    x = x_ref[...].astype(jnp.float32)
    mean = jnp.mean(x, axis=1, keepdims=True)
    centered = x - mean
    var = jnp.mean(centered * centered, axis=1, keepdims=True)
    y = centered * lax.rsqrt(var + EPS)
    # gamma/beta broadcast over batch + spatial axes.
    y = y * g_ref[...].astype(jnp.float32) + b_ref[...].astype(jnp.float32)
    o_ref[...] = y.astype(o_ref.dtype)


def _device_params():
    """(target_bytes_per_block, vmem_limit_bytes) tuned per TPU generation."""
    try:
        kind = jax.devices()[0].device_kind.lower()
    except Exception:
        kind = ""
    if "v7" in kind:
        # 3.2 TB/s HBM makes per-step overhead relatively expensive, but only
        # 64 MiB physical VMEM: ~5 MiB blocks -> 2*(in+out) = 20 MiB << 32 MiB.
        return 5 * 1024 * 1024, 32 * 1024 * 1024
    if "v6" in kind:
        return 4 * 1024 * 1024, 64 * 1024 * 1024
    # v5e / unknown: per-step overhead already <10% at 2 MiB blocks.
    return 2 * 1024 * 1024, 32 * 1024 * 1024


def _choose_tiling(batch, extent, unit_bytes, align, target_bytes, vmem_limit_bytes):
    """Tile `extent` (units of `unit_bytes`, aligned to `align`) and fold batch.

    Returns (b_blk, tile, n_tiles):
      * tile == extent (full) when it fits the per-block target, else a
        balanced `align`-multiple (last grid block may be partial -> masked),
      * b_blk divides `batch`, chosen so the block stays near the target,
      * double-buffered in+out windows stay comfortably inside the VMEM limit.
    """
    # VMEM guard: 2*(in_block + out_block) + slack must fit the scoped limit.
    budget = max(align * unit_bytes, (vmem_limit_bytes - 4 * 1024 * 1024) // 4)
    target = max(align * unit_bytes, min(target_bytes, budget))

    cap = max(align, (target // max(1, unit_bytes)) // align * align)
    if extent <= cap:
        tile, n_tiles = extent, 1
    else:
        n = pl.cdiv(extent, cap)
        tile = pl.cdiv(pl.cdiv(extent, n), align) * align
        n_tiles = pl.cdiv(extent, tile)

    blk_bytes = tile * unit_bytes
    b_blk = 1
    for d in range(batch, 0, -1):
        if batch % d == 0 and d * blk_bytes <= max(target, blk_bytes):
            b_blk = d
            break
    # Keep >= 2 grid steps when there is enough work (v7x megacore balance).
    while b_blk > 1 and (batch // b_blk) * n_tiles < 2:
        b_blk -= 1
        while b_blk > 1 and batch % b_blk != 0:
            b_blk -= 1
    return b_blk, tile, n_tiles


@functools.partial(jax.jit, static_argnums=(3, 4))
def _layer_norm_proxy_impl(x_nchw, gamma, beta, target_bytes, vmem_limit_bytes):
    B, C, H, W = x_nchw.shape
    HW = H * W
    itemsize = jnp.dtype(x_nchw.dtype).itemsize

    # Small-C fast path: both minor dims spatial -> no wasted sublanes, and the
    # C-reduction is plain VPU adds across vregs instead of an XLU reduce.
    small_c = (C * itemsize < 32) and (HW % 128 == 0) and (HW >= 128)
    if small_c:
        S = HW // 128
        x_in = x_nchw.reshape(B, C, S, 128)        # free, contiguous reshape
        g_in = gamma.reshape(1, C, 1, 1)
        b_in = beta.reshape(1, C, 1, 1)
        b_blk, tile, n_tiles = _choose_tiling(
            B, S, C * 128 * itemsize, 8, target_bytes, vmem_limit_bytes)
        x_spec = pl.BlockSpec((b_blk, C, tile, 128), lambda b, t: (b, 0, t, 0))
        p_spec = pl.BlockSpec((1, C, 1, 1), lambda b, t: (0, 0, 0, 0))
    else:
        x_in = x_nchw.reshape(B, C, HW)            # free, contiguous reshape
        g_in = gamma.reshape(1, C, 1)
        b_in = beta.reshape(1, C, 1)
        b_blk, tile, n_tiles = _choose_tiling(
            B, HW, C * itemsize, 128, target_bytes, vmem_limit_bytes)
        x_spec = pl.BlockSpec((b_blk, C, tile), lambda b, t: (b, 0, t))
        p_spec = pl.BlockSpec((1, C, 1), lambda b, t: (0, 0, 0))

    out = pl.pallas_call(
        _layernorm_kernel,
        out_shape=jax.ShapeDtypeStruct(x_in.shape, x_nchw.dtype),
        grid_spec=pltpu.PrefetchScalarGridSpec(
            num_scalar_prefetch=0,
            grid=(B // b_blk, n_tiles),
            in_specs=[x_spec, p_spec, p_spec],
            out_specs=x_spec,
        ),
        compiler_params=pltpu.CompilerParams(
            dimension_semantics=("parallel", "parallel"),
            vmem_limit_bytes=vmem_limit_bytes,
        ),
    )(x_in, g_in, b_in)

    return out.reshape(B, C, H, W)


def layer_norm_proxy(x_nchw, gamma, beta, *, target_bytes=None, vmem_limit_bytes=None):
    """x_nchw: (B, C, H, W). gamma, beta: (C,). Returns (B, C, H, W)."""
    tb, vl = _device_params()
    if target_bytes is None:
        target_bytes = tb
    if vmem_limit_bytes is None:
        vmem_limit_bytes = vl
    return _layer_norm_proxy_impl(x_nchw, gamma, beta, int(target_bytes),
                                  int(vmem_limit_bytes))


def _reference(x_nchw, gamma, beta):
    x = jnp.transpose(x_nchw, (0, 2, 3, 1)).astype(jnp.float32)
    mean = jnp.mean(x, axis=-1, keepdims=True)
    var = jnp.mean((x - mean) ** 2, axis=-1, keepdims=True)
    y = (x - mean) * lax.rsqrt(var + EPS) * gamma.astype(jnp.float32) \
        + beta.astype(jnp.float32)
    return jnp.transpose(y, (0, 3, 1, 2)).astype(x_nchw.dtype)


if __name__ == "__main__":
    keys = jax.random.split(jax.random.PRNGKey(0), 12)

    def run_case(kx, kg, kb, B, C, H, W, **kw):
        x = jax.random.normal(kx, (B, C, H, W), dtype=jnp.float32)
        gamma = 1.0 + 0.1 * jax.random.normal(kg, (C,), dtype=jnp.float32)
        beta = 0.1 * jax.random.normal(kb, (C,), dtype=jnp.float32)
        out = jax.block_until_ready(layer_norm_proxy(x, gamma, beta, **kw))
        ref = _reference(x, gamma, beta)
        assert out.shape == (B, C, H, W)
        assert jnp.allclose(out, ref, atol=1e-5, rtol=1e-5), f"mismatch at {(B, C, H, W)}"

    # 1) Module's expected usage: small-C fast path (C=4, HW=256 lane-aligned).
    run_case(keys[0], keys[1], keys[2], 2, 4, 16, 16)
    # 2) Ragged spatial size (HW=35, not a 128-multiple): full-extent block path.
    run_case(keys[3], keys[4], keys[5], 2, 16, 7, 5)
    # 3) Forced tiny blocks: balanced multi-tile + masked partial last block (lanes).
    run_case(keys[6], keys[7], keys[8], 2, 16, 9, 21, target_bytes=8 * 1024)
    # 4) Forced tiny blocks on the small-C path: masked partial last block (sublanes).
    run_case(keys[9], keys[10], keys[11], 2, 4, 10, 128, target_bytes=8 * 1024)

    print("KERNEL_OK")
</pallas_src>

<mosaic_0001>
module attributes {stable_mosaic.version = 11 : i64} {
  func.func @_layernorm_kernel(%arg0: i32, %arg1: i32, %arg2: memref<1x4x2x128xf32, #tpu.memory_space<vmem>>, %arg3: memref<1x4x1x1xf32, #tpu.memory_space<vmem>>, %arg4: memref<1x4x1x1xf32, #tpu.memory_space<vmem>>, %arg5: memref<1x4x2x128xf32, #tpu.memory_space<vmem>>) attributes {dimension_semantics = [#tpu.dimension_semantics<parallel>, #tpu.dimension_semantics<parallel>], iteration_bounds = array<i64: 2, 1>, scalar_prefetch = 0 : i64, scratch_operands = 0 : i64, tpu.core_type = #tpu.core_type<tc>, window_params = [{transform_indices = @transform_0, window_bounds = array<i64: 1, 4, 2, 128>}, {pipeline_mode = #tpu.pipeline_mode<synchronous>, transform_indices = @transform_1, window_bounds = array<i64: 1, 4, 1, 1>}, {pipeline_mode = #tpu.pipeline_mode<synchronous>, transform_indices = @transform_2, window_bounds = array<i64: 1, 4, 1, 1>}, {transform_indices = @transform_3, window_bounds = array<i64: 1, 4, 2, 128>}]} {
    %c0 = arith.constant 0 : index
    %c0_0 = arith.constant 0 : index
    %c0_1 = arith.constant 0 : index
    %c0_2 = arith.constant 0 : index
    %0 = vector.load %arg2[%c0, %c0_0, %c0_1, %c0_2] : memref<1x4x2x128xf32, #tpu.memory_space<vmem>>, vector<1x4x2x128xf32>
    %cst = arith.constant dense<0.000000e+00> : vector<1x2x128xf32>
    %1 = vector.multi_reduction <add>, %0, %cst [1] : vector<1x4x2x128xf32> to vector<1x2x128xf32>
    %2 = vector.shape_cast %1 : vector<1x2x128xf32> to vector<1x1x2x128xf32>
    %cst_3 = arith.constant 4.000000e+00 : f32
    %3 = vector.broadcast %cst_3 : f32 to vector<1x1x2x128xf32>
    %4 = arith.divf %2, %3 : vector<1x1x2x128xf32>
    %5 = vector.broadcast %4 : vector<1x1x2x128xf32> to vector<1x4x2x128xf32>
    %6 = arith.subf %0, %5 : vector<1x4x2x128xf32>
    %7 = arith.mulf %6, %6 : vector<1x4x2x128xf32>
    %cst_4 = arith.constant dense<0.000000e+00> : vector<1x2x128xf32>
    %8 = vector.multi_reduction <add>, %7, %cst_4 [1] : vector<1x4x2x128xf32> to vector<1x2x128xf32>
    %9 = vector.shape_cast %8 : vector<1x2x128xf32> to vector<1x1x2x128xf32>
    %cst_5 = arith.constant 4.000000e+00 : f32
    %10 = vector.broadcast %cst_5 : f32 to vector<1x1x2x128xf32>
    %11 = arith.divf %9, %10 : vector<1x1x2x128xf32>
    %cst_6 = arith.constant 9.99999974E-6 : f32
    %12 = vector.broadcast %cst_6 : f32 to vector<1x1x2x128xf32>
    %13 = arith.addf %11, %12 : vector<1x1x2x128xf32>
    %14 = math.rsqrt %13 : vector<1x1x2x128xf32>
    %15 = vector.broadcast %14 : vector<1x1x2x128xf32> to vector<1x4x2x128xf32>
    %16 = arith.mulf %6, %15 : vector<1x4x2x128xf32>
    %c0_7 = arith.constant 0 : index
    %c0_8 = arith.constant 0 : index
    %c0_9 = arith.constant 0 : index
    %c0_10 = arith.constant 0 : index
    %17 = vector.load %arg3[%c0_7, %c0_8, %c0_9, %c0_10] : memref<1x4x1x1xf32, #tpu.memory_space<vmem>>, vector<1x4x1x1xf32>
    %18 = vector.broadcast %17 : vector<1x4x1x1xf32> to vector<1x4x2x128xf32>
    %19 = arith.mulf %16, %18 : vector<1x4x2x128xf32>
    %c0_11 = arith.constant 0 : index
    %c0_12 = arith.constant 0 : index
    %c0_13 = arith.constant 0 : index
    %c0_14 = arith.constant 0 : index
    %20 = vector.load %arg4[%c0_11, %c0_12, %c0_13, %c0_14] : memref<1x4x1x1xf32, #tpu.memory_space<vmem>>, vector<1x4x1x1xf32>
    %21 = vector.broadcast %20 : vector<1x4x1x1xf32> to vector<1x4x2x128xf32>
    %22 = arith.addf %19, %21 : vector<1x4x2x128xf32>
    %c0_15 = arith.constant 0 : index
    %c0_16 = arith.constant 0 : index
    %c0_17 = arith.constant 0 : index
    %c0_18 = arith.constant 0 : index
    %23 = vector.load %arg5[%c0_15, %c0_16, %c0_17, %c0_18] : memref<1x4x2x128xf32, #tpu.memory_space<vmem>>, vector<1x4x2x128xf32>
    tpu.vector_store %arg5[%c0_15, %c0_16, %c0_17, %c0_18], %22 {strides = array<i32>} : memref<1x4x2x128xf32, #tpu.memory_space<vmem>>, vector<1x4x2x128xf32>,
    return
  }
  func.func @transform_0(%arg0: i32, %arg1: i32) -> (i32, i32, i32, i32) {
    %c0_i32 = arith.constant 0 : i32
    %c0_i32_0 = arith.constant 0 : i32
    %c0_i32_1 = arith.constant 0 : i32
    return %arg0, %c0_i32, %arg1, %c0_i32_0 : i32, i32, i32, i32
  }
  func.func @transform_1(%arg0: i32, %arg1: i32) -> (i32, i32, i32, i32) {
    %c0_i32 = arith.constant 0 : i32
    %c0_i32_0 = arith.constant 0 : i32
    %c0_i32_1 = arith.constant 0 : i32
    %c0_i32_2 = arith.constant 0 : i32
    %c0_i32_3 = arith.constant 0 : i32
    return %c0_i32, %c0_i32_0, %c0_i32_1, %c0_i32_2 : i32, i32, i32, i32
  }
  func.func @transform_2(%arg0: i32, %arg1: i32) -> (i32, i32, i32, i32) {
    %c0_i32 = arith.constant 0 : i32
    %c0_i32_0 = arith.constant 0 : i32
    %c0_i32_1 = arith.constant 0 : i32
    %c0_i32_2 = arith.constant 0 : i32
    %c0_i32_3 = arith.constant 0 : i32
    return %c0_i32, %c0_i32_0, %c0_i32_1, %c0_i32_2 : i32, i32, i32, i32
  }
  func.func @transform_3(%arg0: i32, %arg1: i32) -> (i32, i32, i32, i32) {
    %c0_i32 = arith.constant 0 : i32
    %c0_i32_0 = arith.constant 0 : i32
    %c0_i32_1 = arith.constant 0 : i32
    return %arg0, %c0_i32, %arg1, %c0_i32_0 : i32, i32, i32, i32
  }
}

</mosaic_0001>

<bundles_post_ra>
// kernel: _layer_norm_proxy_impl.1
= control target key start
LH: loop header
LB: loop body
LE: loop exit
PB: predicated region body
PF: predicated region fallthrough
CT: control target
= control target key end

     0   :  { %s508_s12 = smov 0   ;;  %s510_s13 = smov 0   ;;  %s584_s0 = inlined_call_operand.vmem [shape: f32[2,4,2,128], index: 0, kind: input, shape index: {}]   ;;  %s585_s1 = inlined_call_operand.vmem [shape: f32[1,4,1,1], index: 1, kind: input, shape index: {}]   ;;  %s586_s2 = inlined_call_operand.vmem [shape: f32[1,4,1,1], index: 2, kind: input, shape index: {}]   ;;  %s587_s3 = inlined_call_operand.vmem [shape: f32[2,4,2,128], index: 3, kind: output, shape index: {}]  }
   0x1   :  { %s512_s14 = smov 0  }
   0x2 LB: > { %s25_s15 = sadd.s32 1, %s481_s13  ;;  %p417_p0 = scmp.ge.s32.totalorder %s485_s14, 1  ;;  %s485_s14 = sphi %s512_s14, %s13_s14   ;;  %s481_s13 = sphi %s510_s13, %s589_s13   ;;  %s477_s12 = sphi %s508_s12, %s588_s12  }
   0x3   : > { %p27_p1 = scmp.ge.s32.totalorder %s25_s15, 2  ;;  %p156_p2 = scmp.lt.s32.totalorder %s485_s14, 3 }
   0x5   : > { %s591_s15 = smov (%p27_p1, %s25_s15), 0  ;;  %p157_p3 = pnand %p417_p0, %p156_p2 }
   0x6   : > { %v424_v0 = vld [vmem:[%s585_s1 + $0x2] ss:$0 sm:$0xff] (!%p157_p3)  ;;  %v422_v1 = vld [vmem:[%s585_s1] ss:$0 sm:$0xff] (!%p157_p3)  ;;  %v487_v2 = vmov (!%p157_p3), 0   ;;  %p186_p4 = scmp.lt.s32.totalorder (!%p157_p3), %s477_s12, 1 }
   0x7   : > { %160 = sbr.rel (%p157_p3) target bundleno = 151 (0x97), region = 32  ;;  %460 = vset.pattern.permute.xlu1 (!%p157_p3), %v487_v2  ;;  %459 = vset.pattern.permute.xlu0 (!%p157_p3), %v487_v2  ;;  %v425_v3 = vld [vmem:[%s585_s1 + $0x3] ss:$0 sm:$0xff] (!%p157_p3)  ;;  %v423_v4 = vld [vmem:[%s585_s1 + $0x1] ss:$0 sm:$0xff] (!%p157_p3)  ;;  %vm206_vm0 = vcmask (!%p157_p3), 1041408  }
   0x8   : > { %271 = vperm.xlu1 (!%p157_p3), %460, %v424_v0   ;;  %263 = vperm.xlu0 (!%p157_p3), %459, %v422_v1   ;;  %v427_v5 = vld [vmem:[%s586_s2 + $0x1] ss:$0 sm:$0xff] (!%p157_p3)  ;;  %v426_v6 = vld [vmem:[%s586_s2] ss:$0 sm:$0xff] (!%p157_p3)  ;;  %v429_v7 = vld [vmem:[%s586_s2 + $0x3] ss:$0 sm:$0xff] (!%p157_p3) }
   0x9   : > { %v428_v8 = vld [vmem:[%s586_s2 + $0x2] ss:$0 sm:$0xff] (!%p157_p3) }
   0xc   : > { %275 = vperm.xlu1 (!%p157_p3), %460, %v425_v3   ;;  %267 = vperm.xlu0 (!%p157_p3), %459, %v423_v4  }
   0xe   : > { %s593_s12 = smov (!%p186_p4, %s477_s12), 1 }
   0xf   : > { %s432_s5 = sshll.u32 %s593_s12, 3 }
  0x10   : > { %311 = vperm.xlu1 %460, %v427_v5   ;;  %307 = vperm.xlu0 %459, %v426_v6   ;;  %s193_s8 = scalar_lea.vmem %s584_s0, %s432_s5  ;;  %s201_s11 = scalar_lea.vmem %s587_s3, %s432_s5 }
  0x11   : > { %v202_v9 = vld [vmem:[%s193_s8] sm:$0x3]  ;;  %v203_v10 = vld [vmem:[%s193_s8 + $0x2] sm:$0x3]  ;;  %v204_v13 = vld [vmem:[%s193_s8 + $0x4] sm:$0x3] }
  0x12   : > { %v207_v11 = vsel %vm206_vm0, %v202_v9, 0.0  ;;  %v208_v12 = vsel %vm206_vm0, %v203_v10, 0.0  ;;  %v210_v15 = vsel %vm206_vm0, %v204_v13, 0.0  ;;  %v205_v16 = vld [vmem:[%s193_s8 + $0x6] sm:$0x3] }
  0x13   : > { %v209_v14 = vadd.f32 %v208_v12, %v207_v11  ;;  %v212_v18 = vsel %vm206_vm0, %v205_v16, 0.0 }
  0x14   : > { %319 = vperm.xlu1 %460, %v429_v7   ;;  %315 = vperm.xlu0 %459, %v428_v8  }
  0x15   : > { %v211_v17 = vadd.f32 %v210_v15, %v209_v14 }
  0x17   : > { %v213_v19 = vadd.f32 %v212_v18, %v211_v17 }
  0x19   : > { %v215_v20 = vmul.f32 0.25, %v213_v19 }
  0x1b   : > { %v216_v21 = vsub.f32 %v202_v9, %v215_v20  ;;  %v217_v22 = vsub.f32 %v203_v10, %v215_v20  ;;  %v218_v23 = vsub.f32 %v204_v13, %v215_v20  ;;  %v219_v26 = vsub.f32 %v205_v16, %v215_v20 }
  0x1d   : > { %v220_v24 = vmul.f32 %v216_v21, %v216_v21  ;;  %v221_v25 = vmul.f32 %v217_v22, %v217_v22  ;;  %v222_v27 = vmul.f32 %v218_v23, %v218_v23  ;;  %v223_v31 = vmul.f32 %v219_v26, %v219_v26 }
  0x1f   : > { %v224_v28 = vsel %vm206_vm0, %v220_v24, 0.0  ;;  %v225_v29 = vsel %vm206_vm0, %v221_v25, 0.0  ;;  %v227_v32 = vsel %vm206_vm0, %v222_v27, 0.0  ;;  %v229_v34 = vsel %vm206_vm0, %v223_v31, 0.0 }
  0x20   : > { %v226_v30 = vadd.f32 %v225_v29, %v224_v28 }
  0x22   : > { %v228_v33 = vadd.f32 %v227_v32, %v226_v30 }
  0x24   : > { %v230_v35 = vadd.f32 %v229_v34, %v228_v33 }
  0x26   : > { %v231_v36 = vmul.f32 0.25, %v230_v35 }
  0x28   : > { %v232_v37 = vadd.f32 1e-05, %v231_v36 }
  0x2a   : > { %461 = vrsqrt.f32 %v232_v37 }
  0x34   : > { %v462_v38 = vpop.eup %461 }
  0x35   : > { %v234_v41 = vmul.f32 %v462_v38, %v216_v21  ;;  %v235_v42 = vmul.f32 %v462_v38, %v217_v22  ;;  %v236_v45 = vmul.f32 %v462_v38, %v218_v23  ;;  %v237_v47 = vmul.f32 %v462_v38, %v219_v26 }
  0x87   : > { %v272_v39 = vpop.permute.xlu1 %271  ;;  %v264_v40 = vpop.permute.xlu0 %263 }
  0x88   : > { %v278_v46 = vmul.f32 %v264_v40, %v234_v41  ;;  %v280_v53 = vmul.f32 %v272_v39, %v236_v45 }
  0x8b   : > { %v276_v43 = vpop.permute.xlu1 %275  ;;  %v268_v44 = vpop.permute.xlu0 %267 }
  0x8c   : > { %v279_v48 = vmul.f32 %v268_v44, %v235_v42  ;;  %v281_v54 = vmul.f32 %v276_v43, %v237_v47 }
  0x8f   : > { %v312_v49 = vpop.permute.xlu1 %311  ;;  %v308_v50 = vpop.permute.xlu0 %307 }
  0x90   : > { %v323_v51 = vadd.f32 %v312_v49, %v279_v48  ;;  %v322_v52 = vadd.f32 %v308_v50, %v278_v46 }
  0x92   : > { %327 = vst [vmem:[%s201_s11 + $0x2] sm:$0x3] %v323_v51  ;;  %326 = vst [vmem:[%s201_s11] sm:$0x3] %v322_v52 }
  0x93   : > { %v320_v55 = vpop.permute.xlu1 %319  ;;  %v316_v56 = vpop.permute.xlu0 %315 }
  0x94   : > { %v325_v57 = vadd.f32 %v320_v55, %v281_v54  ;;  %v324_v58 = vadd.f32 %v316_v56, %v280_v53 }
  0x96   : > { %329 = vst [vmem:[%s201_s11 + $0x6] sm:$0x3] %v325_v57  ;;  %328 = vst [vmem:[%s201_s11 + $0x4] sm:$0x3] %v324_v58 }
  0x97 PF: > { %s13_s14 = sadd.s32 1, %s485_s14   ;;  %s588_s12 = smov %s481_s13 }
  0x98   : > { %p10_p5 = scmp.ge.s32.totalorder %s13_s14, 4   ;;  %s589_s13 = smov %s591_s15 }
  0x9a   :  { %12 = sbr.rel (!%p10_p5) target bundleno = 2 (0x2), region = 62 }

</bundles_post_ra>
